<compile_context>
chip_gen: v5e
topology: v5e:2x2
jax: 0.10.0
libtpu: 0.0.40
codegen_flags: <defaults>
</compile_context>

<pallas_src>
import jax
import jax.numpy as jnp
from jax import lax
from jax.experimental import pallas as pl
from jax.experimental.pallas import tpu as pltpu


_SMALL_PATH_BYTES = 2 * 1024 * 1024   # below this the problem runs as 1 grid step


def _round_up(x, m):
    return (x + m - 1) // m * m


def _cdiv(a, b):
    return -(-a // b)


def _vmem_limit_bytes():
    """~75% of this generation's VMEM, capped at 96 MiB; safe fallback 48 MiB."""
    try:
        cap = pltpu.get_tpu_info().vmem_capacity_bytes
    except Exception:
        cap = 64 * 1024 * 1024  # v7x-sized conservative fallback
    return max(16 * 1024 * 1024, min(int(cap * 3 // 4), 96 * 1024 * 1024))


# -----------------------------------------------------------------------------
# Single-block path: whole (B,M,K)/(B,K,N)/(B,M,N) slabs resident in VMEM.
# Used when the problem is tiny and per-grid-step overhead would dominate.
# -----------------------------------------------------------------------------
def _bmm_whole_kernel(a_ref, b_ref, o_ref):
    o_ref[...] = jnp.einsum(
        "bmk,bkn->bmn",
        a_ref[...],
        b_ref[...],
        preferred_element_type=jnp.float32,
    ).astype(o_ref.dtype)


def _bmm_small(a, b, out_dtype):
    B, M, K = a.shape
    N = b.shape[2]
    cost = pl.CostEstimate(
        flops=2 * B * M * N * K,
        transcendentals=0,
        bytes_accessed=(a.size * a.dtype.itemsize
                        + b.size * b.dtype.itemsize
                        + B * M * N * jnp.dtype(out_dtype).itemsize),
    )
    return pl.pallas_call(
        _bmm_whole_kernel,
        out_shape=jax.ShapeDtypeStruct((B, M, N), out_dtype),
        cost_estimate=cost,
        compiler_params=pltpu.CompilerParams(
            vmem_limit_bytes=_vmem_limit_bytes()),
    )(a, b)


# -----------------------------------------------------------------------------
# Tiled path: K-streaming accumulation, waste-aware tile selection.
# -----------------------------------------------------------------------------
def _tile_candidates(dim, align, cap):
    full = _round_up(dim, align)
    cands = {min(full, cap)}
    t = align
    while t <= min(full, cap):
        cands.add(t)
        t *= 2
    return sorted(cands)


def _select_tiles(B, M, N, K, a_item, b_item, o_item, sublane, budget):
    """Pick (tm, tn, tk) minimizing a roofline + step-overhead estimate.

    Accounts for padded FLOPs, HBM traffic including A/B block re-reads
    (A read Np/tn times, B read Mp/tm times in this loop order), per-grid-step
    overhead, VMEM footprint budget and megacore (>=2 parallel blocks).
    """
    PEAK_FLOPS = 2.0e14     # relative ranking only
    HBM_BW = 1.2e12
    STEP_OVERHEAD = 0.35e-6

    best_t, best = None, None
    for tm in _tile_candidates(M, sublane, 1024):
        for tn in _tile_candidates(N, 128, 1024):
            for tk in _tile_candidates(K, 128, 2048):
                # double-buffered inputs + output block (+ f32 acc headroom)
                foot = (2 * (tm * tk * a_item + tk * tn * b_item)
                        + tm * tn * (2 * o_item + 4))
                if foot > budget:
                    continue
                nM, nN, nK = _cdiv(M, tm), _cdiv(N, tn), _cdiv(K, tk)
                Mp, Np, Kp = nM * tm, nN * tn, nK * tk
                flops = 2.0 * B * Mp * Np * Kp
                byts = B * (Mp * Kp * a_item * nN
                            + Kp * Np * b_item * nM
                            + Mp * Np * o_item)
                steps = B * nM * nN * nK
                t = max(flops / PEAK_FLOPS, byts / HBM_BW) + steps * STEP_OVERHEAD
                if B * nM * nN < 2:   # keep >=2 parallel blocks (v7x 2 TCs)
                    t *= 1.9
                if best_t is None or t < best_t:
                    best_t, best = t, (tm, tn, tk)
    return best


def _make_tiled_kernel(K, tk, acc_in_out):
    """K-streaming accumulator kernel with in-kernel K-tail masking."""
    k_rem = K % tk  # static; 0 => no tail masking needed

    def kernel(a_ref, b_ref, o_ref, *scratch):
        # a_ref: (tm, tk), b_ref: (tk, tn), o_ref: (tm, tn) — batch squeezed.
        acc_ref = o_ref if acc_in_out else scratch[0]
        k = pl.program_id(3)
        nk = pl.num_programs(3)

        @pl.when(k == 0)
        def _init():
            acc_ref[...] = jnp.zeros_like(acc_ref)

        def _accum(a_blk, b_blk):
            acc_ref[...] += jnp.dot(a_blk, b_blk,
                                    preferred_element_type=jnp.float32)

        if k_rem == 0:
            _accum(a_ref[...], b_ref[...])
        else:
            is_last = k == nk - 1

            @pl.when(jnp.logical_not(is_last))
            def _body():
                _accum(a_ref[...], b_ref[...])

            @pl.when(is_last)
            def _tail():
                # Zero-mask the out-of-range K columns/rows (OOB contents are
                # garbage); one VPU select pair on the last K step only.
                a_blk = a_ref[...]
                b_blk = b_ref[...]
                col = lax.broadcasted_iota(jnp.int32, a_blk.shape, 1)
                row = lax.broadcasted_iota(jnp.int32, b_blk.shape, 0)
                _accum(jnp.where(col < k_rem, a_blk, jnp.zeros_like(a_blk)),
                       jnp.where(row < k_rem, b_blk, jnp.zeros_like(b_blk)))

        if not acc_in_out:
            @pl.when(k == nk - 1)
            def _finalize():
                o_ref[...] = acc_ref[...].astype(o_ref.dtype)

    return kernel


def _bmm_tiled(a, b, out_dtype):
    B, M, K = a.shape
    N = b.shape[2]
    a_item = a.dtype.itemsize
    b_item = b.dtype.itemsize
    o_item = jnp.dtype(out_dtype).itemsize
    # dtype-aware sublane rounding: f32 -> 8, bf16/f16 -> 16, int8/fp8 -> 32
    sublane = {4: 8, 2: 16, 1: 32}.get(a_item, 8)

    vmem_limit = _vmem_limit_bytes()
    budget = int(0.6 * vmem_limit)
    tm, tn, tk = _select_tiles(B, M, N, K, a_item, b_item, o_item,
                               sublane, budget)

    nM, nN, nK = _cdiv(M, tm), _cdiv(N, tn), _cdiv(K, tk)
    Mp, Np, Kp = nM * tm, nN * tn, nK * tk
    grid = (B, nM, nN, nK)

    # f32 output: accumulate directly into the (VMEM-resident) output block.
    acc_in_out = jnp.dtype(out_dtype) == jnp.dtype(jnp.float32)
    scratch_shapes = [] if acc_in_out else [pltpu.VMEM((tm, tn), jnp.float32)]

    # A blocks are re-read nN times, B blocks nM times in this loop order.
    cost = pl.CostEstimate(
        flops=2 * B * Mp * Np * Kp,
        transcendentals=0,
        bytes_accessed=int(B * (Mp * Kp * a_item * nN
                                + Kp * Np * b_item * nM
                                + Mp * Np * o_item)),
    )

    kernel = _make_tiled_kernel(K, tk, acc_in_out)

    # TODO(synk): optional bf16 MXU path (cast A/B tiles to bf16, keep f32
    # accumulation) would ~3x MXU throughput on v6e/v7x at an accuracy cost.
    return pl.pallas_call(
        kernel,
        out_shape=jax.ShapeDtypeStruct((B, M, N), out_dtype),
        grid_spec=pltpu.PrefetchScalarGridSpec(
            num_scalar_prefetch=0,
            grid=grid,
            in_specs=[
                pl.BlockSpec((None, tm, tk), lambda bb, i, j, k: (bb, i, k)),
                pl.BlockSpec((None, tk, tn), lambda bb, i, j, k: (bb, k, j)),
            ],
            out_specs=pl.BlockSpec((None, tm, tn),
                                   lambda bb, i, j, k: (bb, i, j)),
            scratch_shapes=scratch_shapes,
        ),
        compiler_params=pltpu.CompilerParams(
            dimension_semantics=("parallel", "parallel", "parallel",
                                 "arbitrary"),
            vmem_limit_bytes=vmem_limit,
        ),
        cost_estimate=cost,
    )(a, b)


def pallas_batched_einsum(a, b):
    """Computes jnp.einsum('bmk,bkn->bmn', a, b) with a Pallas TPU kernel."""
    assert a.ndim == 3 and b.ndim == 3
    B, M, K = a.shape
    B2, K2, N = b.shape
    assert B == B2 and K == K2, "shape mismatch for equation bmk,bkn->bmn"

    # Matches the torch module: output dtype == input_0.dtype (alpha=1, beta=0).
    out_dtype = a.dtype

    resident_bytes = (a.size * a.dtype.itemsize
                      + b.size * b.dtype.itemsize
                      + B * M * N * jnp.dtype(out_dtype).itemsize)
    if resident_bytes <= _SMALL_PATH_BYTES:
        return _bmm_small(a, b, out_dtype)
    return _bmm_tiled(a, b, out_dtype)


class Einsum:
    """JAX/Pallas port of the cuTENSOR `Einsum` module (forward only).

    Binary contraction 'bmk,bkn->bmn' runs in a Pallas TPU kernel (MXU);
    alpha=1, beta=0 (module defaults); parameter-free.
    """

    def __init__(self, equation):
        self.equation = equation.replace(" ", "")
        self.reset_parameters()

    def reset_parameters(self):
        pass  # no parameters, as in the reference module

    def forward(self, input_0, input_1):
        if self.equation == "bmk,bkn->bmn":
            return pallas_batched_einsum(input_0, input_1)
        # TODO(synk): general equations and the cuTENSOR complex32 rrii/riri
        # buffer-packing + autotune paths fall back to XLA einsum.
        return jnp.einsum(self.equation, input_0, input_1).astype(input_0.dtype)

    __call__ = forward


if __name__ == "__main__":
    key = jax.random.PRNGKey(0)
    k0, k1, k2, k3 = jax.random.split(key, 4)

    mod = Einsum("bmk,bkn->bmn")

    # 1) Small demo shapes -> single-grid-step whole-slab path.
    B, M, K, N = 2, 16, 32, 64
    x = jax.random.normal(k0, (B, M, K), dtype=jnp.float32)
    y = jax.random.normal(k1, (B, K, N), dtype=jnp.float32)
    out = jax.block_until_ready(mod(x, y))
    ref = jnp.einsum("bmk,bkn->bmn", x, y)
    assert out.shape == ref.shape == (B, M, N)
    assert jnp.allclose(out, ref, atol=1e-4, rtol=1e-4)

    # 2) Non-tile-aligned shapes -> tiled accumulator path (exercises the
    #    unpadded output edge blocks and the in-kernel K-tail masking).
    B2, M2, K2, N2 = 2, 300, 600, 384
    x2 = jax.random.normal(k2, (B2, M2, K2), dtype=jnp.float32)
    y2 = jax.random.normal(k3, (B2, K2, N2), dtype=jnp.float32)
    out2 = jax.block_until_ready(mod(x2, y2))
    ref2 = jnp.einsum("bmk,bkn->bmn", x2, y2)
    assert out2.shape == ref2.shape == (B2, M2, N2)
    assert jnp.allclose(out2, ref2, atol=1e-2, rtol=1e-3)

    print("KERNEL_OK")
</pallas_src>

<mosaic_0001>
module attributes {stable_mosaic.version = 11 : i64} {
  func.func @_bmm_whole_kernel(%arg0: memref<2x16x32xf32, #tpu.memory_space<vmem>>, %arg1: memref<2x32x64xf32, #tpu.memory_space<vmem>>, %arg2: memref<2x16x64xf32, #tpu.memory_space<vmem>>) attributes {dimension_semantics = [], scalar_prefetch = 0 : i64, scratch_operands = 0 : i64, tpu.core_type = #tpu.core_type<tc>} {
    %c0 = arith.constant 0 : index
    %c0_0 = arith.constant 0 : index
    %c0_1 = arith.constant 0 : index
    %0 = vector.load %arg0[%c0, %c0_0, %c0_1] : memref<2x16x32xf32, #tpu.memory_space<vmem>>, vector<2x16x32xf32>
    %c0_2 = arith.constant 0 : index
    %c0_3 = arith.constant 0 : index
    %c0_4 = arith.constant 0 : index
    %1 = vector.load %arg1[%c0_2, %c0_3, %c0_4] : memref<2x32x64xf32, #tpu.memory_space<vmem>>, vector<2x32x64xf32>
    "tpu.trace_start"() <{level = 10 : i32, message = "bmk,bkn->bmn"}> : () -> ()
    %cst = arith.constant dense<0.000000e+00> : vector<2x16x64xf32>
    %2 = tpu.matmul %0, %1, %cst {dimension_numbers = #tpu.dot_dimension_numbers<[2], [1], [1], [2], [0, 0, 0, 1, 1, 2], [0], [0]>} : vector<2x16x32xf32>, vector<2x32x64xf32>, vector<2x16x64xf32> -> vector<2x16x64xf32>
    "tpu.trace_stop"() : () -> ()
    %c0_5 = arith.constant 0 : index
    %c0_6 = arith.constant 0 : index
    %c0_7 = arith.constant 0 : index
    %3 = vector.load %arg2[%c0_5, %c0_6, %c0_7] : memref<2x16x64xf32, #tpu.memory_space<vmem>>, vector<2x16x64xf32>
    tpu.vector_store %arg2[%c0_5, %c0_6, %c0_7], %2 {strides = array<i32>} : memref<2x16x64xf32, #tpu.memory_space<vmem>>, vector<2x16x64xf32>,
    return
  }
}

</mosaic_0001>

<bundles_post_ra>
// kernel: tpu_custom_call.1
= control target key start
LH: loop header
LB: loop body
LE: loop exit
PB: predicated region body
PF: predicated region fallthrough
CT: control target
= control target key end

     0   :  { %7 = vsyncpa [#allocation3], 0  ;;  %s273_s0 = inlined_call_operand.hbm [shape: f32[2,16,32], index: 0, kind: input, shape index: {}]   ;;  %s274_s1 = inlined_call_operand.hbm [shape: f32[2,32,64], index: 1, kind: input, shape index: {}]   ;;  %s275_s2 = inlined_call_operand.hbm [shape: f32[2,16,64], index: 2, kind: output, shape index: {}]  }
   0x1   :  { %8 = vsyncpa [#allocation6], 0 }
   0x2   :  { %9 = vsyncpa [#allocation4], 0  ;;  %s14_s11 = sshll.u32 %s273_s0, 4  ;;  %s235_s12 = smov [#allocation2]   ;;  %s15_s11 = int_to_ptr.hbm [resolvable:$true] %s14_s11 }
   0x3   :  { %s16_s13 = sshll.u32 %s235_s12, 4  ;;  %s27_s16 = sshll.u32 %s274_s1, 4  ;;  %s17_s13 = int_to_ptr.vmem [resolvable:$true] %s16_s13  ;;  %s28_s16 = int_to_ptr.hbm [resolvable:$true] %s27_s16 }
   0x4   :  { %s236_s17 = smov 128   ;;  %s237_s18 = smov 8  }
   0x5   :  { %22 = dma.hbm_to_vmem [thread:$0]  %s15_s11, 512, %s17_s13, [#allocation3], %s236_s17, %s236_s17, %s237_s18  }
   0x6   :  { %s238_s19 = smov [#allocation5]  }
   0x7   :  { %s29_s20 = sshll.u32 %s238_s19, 4  ;;  %s30_s20 = int_to_ptr.vmem [resolvable:$true] %s29_s20 }
   0x8   :  { %35 = dma.hbm_to_vmem [thread:$0]  %s28_s16, 1024, %s30_s20, [#allocation6], %s236_s17, %s236_s17, %s237_s18  }
   0x9   :  { %229 = dma.done.wait [#allocation3], 512  }
   0xa   :  { %230 = vsyncadd [#allocation3], 4294966784 }
   0xb   :  { %231 = dma.done.wait [#allocation6], 1024  }
   0xc   :  { %232 = vsyncadd [#allocation6], 4294966272  ;;  %v51_v0 = vld [vmem:[#allocation5 + $0x18] sm:$0xff]  ;;  %v50_v2 = vld [vmem:[#allocation5 + $0x10] sm:$0xff]  ;;  %vm56_vm0 = vcmask 261120   ;;  %vm115_vm1 = vcmask 523264  }
   0xd   :  { %v55_v1 = vld [vmem:[#allocation5 + $0x38] sm:$0xff]  ;;  %144 = vmatpush.msra.mxu2 %v51_v0  ;;  %v54_v3 = vld [vmem:[#allocation5 + $0x30] sm:$0xff]  ;;  %v49_v4 = vld [vmem:[#allocation5 + $0x8] sm:$0xff]  ;;  %75 = vmatpush.msra.mxu0 %v51_v0  ;;  %s239_s0 = smov [#allocation7]   ;;  %s126_s23 = sshll.u32 %s275_s2, 4  ;;  %s127_s23 = int_to_ptr.hbm [resolvable:$true] %s126_s23 }
   0xe   :  { %148 = vmatpush.msra.mxu3 %v55_v1  ;;  %v53_v5 = vld [vmem:[#allocation5 + $0x28] sm:$0xff]  ;;  %104 = vmatpush.msra.mxu1 %v55_v1  ;;  %v48_v6 = vld [vmem:[#allocation5] sm:$0xff]  ;;  %v47_v9 = vld [vmem:[#allocation2 + $0x18] sm:$0xff]  ;;  %s124_s1 = sshll.u32 %s239_s0, 4  ;;  %s125_s1 = int_to_ptr.vmem [resolvable:$true] %s124_s1 }
   0xf   :  { %145 = vmatpush.msra.mxu2 %v50_v2  ;;  %v52_v7 = vld [vmem:[#allocation5 + $0x20] sm:$0xff]  ;;  %76 = vmatpush.msra.mxu0 %v50_v2  ;;  %v45_v8 = vld [vmem:[#allocation2 + $0x8] sm:$0xff]  ;;  %v46_v11 = vld [vmem:[#allocation2 + $0x10] sm:$0xff] }
  0x10   :  { %149 = vmatpush.msra.mxu3 %v54_v3  ;;  %105 = vmatpush.msra.mxu1 %v54_v3  ;;  %v44_v10 = vld [vmem:[#allocation2] sm:$0xff] }
  0x11   :  { %146 = vmatpush.msra.mxu2 %v49_v4  ;;  %77 = vmatpush.msra.mxu0 %v49_v4 }
  0x12   :  { %150 = vmatpush.msra.mxu3 %v53_v5  ;;  %106 = vmatpush.msra.mxu1 %v53_v5 }
  0x13   :  { %147 = vmatpush.msra.mxu2 %v48_v6  ;;  %78 = vmatpush.msra.mxu0 %v48_v6 }
  0x14   :  { %151 = vmatpush.msra.mxu3 %v52_v7  ;;  %141 = vmatmul.msk.f32.vlgmr.msra.gmra.mxu2 %vm56_vm0, %v45_v8 }
  0x15   :  { %143 = vmatmul.msk.f32.vlgmr.msra.gmra.mxu3 %vm56_vm0, %v47_v9  ;;  %107 = vmatpush.msra.mxu1 %v52_v7 }
  0x16   :  { %140 = vmatmul.msk.f32.vlgmr.msra.gmra.mxu0 %vm56_vm0, %v44_v10  ;;  %142 = vmatmul.msk.f32.vlgmr.msra.gmra.mxu1 %vm56_vm0, %v46_v11 }
  0x93   :  { %v80_v12 = vpop.f32.mrf.mxu0  ;;  %v109_v13 = vpop.f32.mrf.mxu1 }
  0x94   :  { %116 = vst.msk [vmem:[#allocation7] sm:$0xff] %vm115_vm1, %v80_v12 }
  0x95   :  { %118 = vst.msk [vmem:[#allocation7 + $0x10] sm:$0xff] %vm115_vm1, %v109_v13 }
  0x97   :  { %v83_v14 = vpop.f32.mrf.mxu2 }
  0x98   :  { %v112_v15 = vpop.f32.mrf.mxu3  ;;  %117 = vst.msk [vmem:[#allocation7 + $0x8] sm:$0xff] %vm115_vm1, %v83_v14 }
  0x99   :  { %119 = vst.msk [vmem:[#allocation7 + $0x18] sm:$0xff] %vm115_vm1, %v112_v15 }
  0x9a   :  { %132 = dma.vmem_to_hbm [thread:$0]  %s125_s1, 512, %s127_s23, [#allocation4], %s236_s17, %s236_s17, %s237_s18  }
  0x9b   :  { %233 = dma.done.wait [#allocation4], 512  }
  0x9c   :  { %234 = vsyncadd [#allocation4], 4294966784 }
  0x9d   :  { %137 = vsyncpa [#allocation3], 1 }
  0x9e   :  { %138 = vsyncpa [#allocation6], 1 }
  0x9f   :  { %139 = vsyncpa [#allocation4], 1 }

</bundles_post_ra>
